<compile_context>
chip_gen: v6e
topology: v6e:2x2x1
jax: 0.10.0
libtpu: 0.0.40
codegen_flags: <defaults>
</compile_context>

<pallas_src>
import functools

import jax
import jax.numpy as jnp
from jax import lax
from jax.experimental import pallas as pl
from jax.experimental.pallas import tpu as pltpu

_LANE = 128


def _round_up(x, m):
    return ((x + m - 1) // m) * m


def _pick_spatial_tile(s_rows, ts_cap):
    """Pick T_S (128-pixel rows per tile): a multiple of 8 that is <= ts_cap,
    preferring an exact divisor of s_rows so no padding/masking is needed."""
    if s_rows % 8 == 0:
        t = min(ts_cap, s_rows)
        t -= t % 8
        while t >= 8:
            if s_rows % t == 0:
                return t
            t -= 8
    return min(_round_up(s_rows, 8), ts_cap)


def _soft_iou_kernel(x_ref, t_ref, out_ref, inter_acc, spred_acc, count_acc,
                     *, n_classes, tile_rows, hw_valid, needs_mask):
    # x_ref:   (1, C, T_S, 128)  logits tile (caller dtype)
    # t_ref:   (1, T_S, 128)     int32 labels (padded pixels hold n_classes)
    # out_ref: (1, C, 1)         per-sample, per-class soft-IoU ratio
    # *_acc:   (C, 128) f32      per-class, per-lane partial sums
    C = n_classes
    k = pl.program_id(1)

    @pl.when(k == 0)
    def _init():
        inter_acc[...] = jnp.zeros_like(inter_acc)
        spred_acc[...] = jnp.zeros_like(spred_acc)
        count_acc[...] = jnp.zeros_like(count_acc)

    labels = t_ref[0]                                   # (T_S, 128) int32

    # --- softmax over the class axis: element-wise across (T_S,128) slabs ---
    m = x_ref[0, 0].astype(jnp.float32)
    for c in range(1, C):
        m = jnp.maximum(m, x_ref[0, c].astype(jnp.float32))
    e = [jnp.exp(x_ref[0, c].astype(jnp.float32) - m) for c in range(C)]
    denom = e[0]
    for c in range(1, C):
        denom = denom + e[c]
    inv = pl.reciprocal(denom, approx=True)             # EUP slot (cheap)
    inv = inv * (2.0 - denom * inv)                     # 1 Newton step -> f32 accuracy

    if needs_mask:
        # Zero the probabilities of padded pixels via `inv` (one mask for all
        # classes).  Padded labels == n_classes already keep them out of the
        # one-hot masks below.
        row = lax.broadcasted_iota(jnp.int32, (tile_rows, _LANE), 0)
        col = lax.broadcasted_iota(jnp.int32, (tile_rows, _LANE), 1)
        pix = (k * tile_rows + row) * _LANE + col
        inv = jnp.where(pix < hw_valid, inv, 0.0)

    # --- per-class partials: sublane reduce per tile, lane reduce deferred ---
    for c in range(C):
        pred_c = e[c] * inv                             # (T_S, 128)
        mask_c = labels == c                            # bool one-hot, no f32 temp
        inter_acc[c:c + 1, :] += jnp.sum(
            jnp.where(mask_c, pred_c, 0.0), axis=0, keepdims=True)
        spred_acc[c:c + 1, :] += jnp.sum(pred_c, axis=0, keepdims=True)
        count_acc[c:c + 1, :] += jnp.sum(
            mask_c.astype(jnp.float32), axis=0, keepdims=True)

    @pl.when(k == pl.num_programs(1) - 1)
    def _finalize():
        inter_c = jnp.sum(inter_acc[...], axis=1, keepdims=True)   # (C, 1)
        spred_c = jnp.sum(spred_acc[...], axis=1, keepdims=True)
        count_c = jnp.sum(count_acc[...], axis=1, keepdims=True)
        union_c = spred_c + count_c - inter_c
        out_ref[0] = inter_c / (union_c + 1e-16)


def soft_iou_loss(logits_nchw, target_nhw, n_classes):
    """logits: (N, C, H, W) float ; target: (N, H, W) integer class ids."""
    N, C, H, W = logits_nchw.shape
    assert C == n_classes
    HW = H * W
    S = pl.cdiv(HW, _LANE)                       # number of 128-pixel rows

    # VMEM budget: double-buffered (logits + labels) blocks plus ~4 f32-sized
    # in-kernel temporaries per logits block, kept under ~12 MiB so the kernel
    # fits v5e's 16 MiB scoped-VMEM default (and trivially v6e/v7x).
    item = jnp.dtype(logits_nchw.dtype).itemsize
    bytes_per_row = (2 * (C * item + 4) + 4 * C * 4) * _LANE
    ts_cap = max(8, ((12 * 1024 * 1024) // bytes_per_row) // 8 * 8)
    T_S = int(_pick_spatial_tile(S, ts_cap))
    S_pad = _round_up(S, T_S)
    HW_pad = S_pad * _LANE
    needs_mask = HW_pad != HW
    num_k = S_pad // T_S

    # Keep the caller's logits dtype (no wrapper-side f32 upcast: upcast
    # happens in-kernel after the VMEM load).
    x = logits_nchw.reshape(N, C, HW)
    # NOTE: labels could be narrowed to int8 (n_classes <= 127) to shave HBM
    # bytes; kept int32 here for layout robustness.
    t = target_nhw.reshape(N, HW).astype(jnp.int32)
    if needs_mask:
        x = jnp.pad(x, ((0, 0), (0, 0), (0, HW_pad - HW)))
        t = jnp.pad(t, ((0, 0), (0, HW_pad - HW)), constant_values=n_classes)
    x = x.reshape(N, C, S_pad, _LANE)
    t = t.reshape(N, S_pad, _LANE)

    kernel = functools.partial(
        _soft_iou_kernel,
        n_classes=C, tile_rows=T_S, hw_valid=HW, needs_mask=needs_mask)

    ratios = pl.pallas_call(
        kernel,
        out_shape=jax.ShapeDtypeStruct((N, C, 1), jnp.float32),
        grid_spec=pltpu.PrefetchScalarGridSpec(
            num_scalar_prefetch=0,
            grid=(N, num_k),
            in_specs=[
                pl.BlockSpec((1, C, T_S, _LANE), lambda i, k: (i, 0, k, 0)),
                pl.BlockSpec((1, T_S, _LANE), lambda i, k: (i, k, 0)),
            ],
            out_specs=pl.BlockSpec((1, C, 1), lambda i, k: (i, 0, 0)),
            scratch_shapes=[
                pltpu.VMEM((C, _LANE), jnp.float32),   # inter partials
                pltpu.VMEM((C, _LANE), jnp.float32),   # sum(pred) partials
                pltpu.VMEM((C, _LANE), jnp.float32),   # label-count partials
            ],
        ),
        compiler_params=pltpu.CompilerParams(
            # Batch axis can be split across TensorCores (v7x megacore);
            # the spatial reduction axis stays sequential (accumulators).
            dimension_semantics=("parallel", "arbitrary"),
        ),
    )(x, t)

    # -mean over (N, C): finalize outside the kernel.
    return -jnp.mean(ratios)


def soft_iou_loss_ref(logits_nchw, target_nhw, n_classes):
    """Pure-JAX reference mirroring the PyTorch module."""
    N, C, H, W = logits_nchw.shape
    pred = jax.nn.softmax(logits_nchw.astype(jnp.float32), axis=1)
    onehot = jax.nn.one_hot(target_nhw, n_classes, axis=1, dtype=jnp.float32)
    inter = (pred * onehot).reshape(N, C, -1).sum(axis=2)
    union = (pred + onehot - pred * onehot).reshape(N, C, -1).sum(axis=2)
    return -(inter / (union + 1e-16)).mean()


if __name__ == "__main__":
    n_classes = 4
    N, H, W = 2, 16, 16

    key = jax.random.PRNGKey(0)
    k_x, k_t = jax.random.split(key)
    logits = jax.random.normal(k_x, (N, n_classes, H, W), dtype=jnp.float32)
    target = jax.random.randint(k_t, (N, H, W), 0, n_classes, dtype=jnp.int32)

    loss = jax.block_until_ready(soft_iou_loss(logits, target, n_classes))
    ref = jax.block_until_ready(soft_iou_loss_ref(logits, target, n_classes))

    # Tolerance slightly relaxed vs 1e-5 because the softmax normalization
    # uses the EUP approximate reciprocal (+1 Newton step).
    assert jnp.allclose(loss, ref, atol=1e-4, rtol=1e-4), (loss, ref)

    print("KERNEL_OK")
</pallas_src>

<mosaic_0001>
module attributes {stable_mosaic.version = 11 : i64} {
  func.func @_soft_iou_kernel(%arg0: i32, %arg1: i32, %arg2: memref<1x4x8x128xf32, #tpu.memory_space<vmem>>, %arg3: memref<1x8x128xi32, #tpu.memory_space<vmem>>, %arg4: memref<1x4x1xf32, #tpu.memory_space<vmem>>, %arg5: memref<4x128xf32, #tpu.memory_space<vmem>>, %arg6: memref<4x128xf32, #tpu.memory_space<vmem>>, %arg7: memref<4x128xf32, #tpu.memory_space<vmem>>) attributes {dimension_semantics = [#tpu.dimension_semantics<parallel>, #tpu.dimension_semantics<arbitrary>], iteration_bounds = array<i64: 2, 1>, scalar_prefetch = 0 : i64, scratch_operands = 3 : i64, tpu.core_type = #tpu.core_type<tc>, window_params = [{transform_indices = @transform_0, window_bounds = array<i64: 1, 4, 8, 128>}, {transform_indices = @transform_1, window_bounds = array<i64: 1, 8, 128>}, {transform_indices = @transform_2, window_bounds = array<i64: 1, 4, 1>}]} {
    %c0_i32 = arith.constant 0 : i32
    %0 = arith.cmpi eq, %arg1, %c0_i32 : i32
    %1 = arith.extui %0 : i1 to i32
    %c0_i32_0 = arith.constant 0 : i32
    %2 = arith.cmpi ne, %1, %c0_i32_0 : i32
    scf.if %2 {
      %cst_100 = arith.constant 0.000000e+00 : f32
      %143 = vector.broadcast %cst_100 : f32 to vector<4x128xf32>
      %c0_101 = arith.constant 0 : index
      %c0_102 = arith.constant 0 : index
      %144 = vector.load %arg5[%c0_101, %c0_102] : memref<4x128xf32, #tpu.memory_space<vmem>>, vector<4x128xf32>
      tpu.vector_store %arg5[%c0_101, %c0_102], %143 {strides = array<i32>} : memref<4x128xf32, #tpu.memory_space<vmem>>, vector<4x128xf32>,
      %cst_103 = arith.constant 0.000000e+00 : f32
      %145 = vector.broadcast %cst_103 : f32 to vector<4x128xf32>
      %c0_104 = arith.constant 0 : index
      %c0_105 = arith.constant 0 : index
      %146 = vector.load %arg6[%c0_104, %c0_105] : memref<4x128xf32, #tpu.memory_space<vmem>>, vector<4x128xf32>
      tpu.vector_store %arg6[%c0_104, %c0_105], %145 {strides = array<i32>} : memref<4x128xf32, #tpu.memory_space<vmem>>, vector<4x128xf32>,
      %cst_106 = arith.constant 0.000000e+00 : f32
      %147 = vector.broadcast %cst_106 : f32 to vector<4x128xf32>
      %c0_107 = arith.constant 0 : index
      %c0_108 = arith.constant 0 : index
      %148 = vector.load %arg7[%c0_107, %c0_108] : memref<4x128xf32, #tpu.memory_space<vmem>>, vector<4x128xf32>
      tpu.vector_store %arg7[%c0_107, %c0_108], %147 {strides = array<i32>} : memref<4x128xf32, #tpu.memory_space<vmem>>, vector<4x128xf32>,
    } else {
    }
    %c0 = arith.constant 0 : index
    %c0_1 = arith.constant 0 : index
    %c0_2 = arith.constant 0 : index
    %3 = vector.load %arg3[%c0, %c0_1, %c0_2] : memref<1x8x128xi32, #tpu.memory_space<vmem>>, vector<1x8x128xi32>
    %4 = vector.shape_cast %3 : vector<1x8x128xi32> to vector<8x128xi32>
    %c0_3 = arith.constant 0 : index
    %c0_4 = arith.constant 0 : index
    %c0_5 = arith.constant 0 : index
    %c0_6 = arith.constant 0 : index
    %5 = vector.load %arg2[%c0_3, %c0_4, %c0_5, %c0_6] : memref<1x4x8x128xf32, #tpu.memory_space<vmem>>, vector<1x1x8x128xf32>
    %6 = vector.shape_cast %5 : vector<1x1x8x128xf32> to vector<8x128xf32>
    %c0_7 = arith.constant 0 : index
    %c1 = arith.constant 1 : index
    %c0_8 = arith.constant 0 : index
    %c0_9 = arith.constant 0 : index
    %7 = vector.load %arg2[%c0_7, %c1, %c0_8, %c0_9] : memref<1x4x8x128xf32, #tpu.memory_space<vmem>>, vector<1x1x8x128xf32>
    %8 = vector.shape_cast %7 : vector<1x1x8x128xf32> to vector<8x128xf32>
    %9 = arith.maximumf %6, %8 : vector<8x128xf32>
    %c0_10 = arith.constant 0 : index
    %c2 = arith.constant 2 : index
    %c0_11 = arith.constant 0 : index
    %c0_12 = arith.constant 0 : index
    %10 = vector.load %arg2[%c0_10, %c2, %c0_11, %c0_12] : memref<1x4x8x128xf32, #tpu.memory_space<vmem>>, vector<1x1x8x128xf32>
    %11 = vector.shape_cast %10 : vector<1x1x8x128xf32> to vector<8x128xf32>
    %12 = arith.maximumf %9, %11 : vector<8x128xf32>
    %c0_13 = arith.constant 0 : index
    %c3 = arith.constant 3 : index
    %c0_14 = arith.constant 0 : index
    %c0_15 = arith.constant 0 : index
    %13 = vector.load %arg2[%c0_13, %c3, %c0_14, %c0_15] : memref<1x4x8x128xf32, #tpu.memory_space<vmem>>, vector<1x1x8x128xf32>
    %14 = vector.shape_cast %13 : vector<1x1x8x128xf32> to vector<8x128xf32>
    %15 = arith.maximumf %12, %14 : vector<8x128xf32>
    %c0_16 = arith.constant 0 : index
    %c0_17 = arith.constant 0 : index
    %c0_18 = arith.constant 0 : index
    %c0_19 = arith.constant 0 : index
    %16 = vector.load %arg2[%c0_16, %c0_17, %c0_18, %c0_19] : memref<1x4x8x128xf32, #tpu.memory_space<vmem>>, vector<1x1x8x128xf32>
    %17 = vector.shape_cast %16 : vector<1x1x8x128xf32> to vector<8x128xf32>
    %18 = arith.subf %17, %15 : vector<8x128xf32>
    %19 = math.exp %18 : vector<8x128xf32>
    %c0_20 = arith.constant 0 : index
    %c1_21 = arith.constant 1 : index
    %c0_22 = arith.constant 0 : index
    %c0_23 = arith.constant 0 : index
    %20 = vector.load %arg2[%c0_20, %c1_21, %c0_22, %c0_23] : memref<1x4x8x128xf32, #tpu.memory_space<vmem>>, vector<1x1x8x128xf32>
    %21 = vector.shape_cast %20 : vector<1x1x8x128xf32> to vector<8x128xf32>
    %22 = arith.subf %21, %15 : vector<8x128xf32>
    %23 = math.exp %22 : vector<8x128xf32>
    %c0_24 = arith.constant 0 : index
    %c2_25 = arith.constant 2 : index
    %c0_26 = arith.constant 0 : index
    %c0_27 = arith.constant 0 : index
    %24 = vector.load %arg2[%c0_24, %c2_25, %c0_26, %c0_27] : memref<1x4x8x128xf32, #tpu.memory_space<vmem>>, vector<1x1x8x128xf32>
    %25 = vector.shape_cast %24 : vector<1x1x8x128xf32> to vector<8x128xf32>
    %26 = arith.subf %25, %15 : vector<8x128xf32>
    %27 = math.exp %26 : vector<8x128xf32>
    %c0_28 = arith.constant 0 : index
    %c3_29 = arith.constant 3 : index
    %c0_30 = arith.constant 0 : index
    %c0_31 = arith.constant 0 : index
    %28 = vector.load %arg2[%c0_28, %c3_29, %c0_30, %c0_31] : memref<1x4x8x128xf32, #tpu.memory_space<vmem>>, vector<1x1x8x128xf32>
    %29 = vector.shape_cast %28 : vector<1x1x8x128xf32> to vector<8x128xf32>
    %30 = arith.subf %29, %15 : vector<8x128xf32>
    %31 = math.exp %30 : vector<8x128xf32>
    %32 = arith.addf %19, %23 : vector<8x128xf32>
    %33 = arith.addf %32, %27 : vector<8x128xf32>
    %34 = arith.addf %33, %31 : vector<8x128xf32>
    %35 = tpu.reciprocal %34 {approx = true} : vector<8x128xf32> -> vector<8x128xf32>
    %36 = arith.mulf %34, %35 : vector<8x128xf32>
    %cst = arith.constant 2.000000e+00 : f32
    %37 = vector.broadcast %cst : f32 to vector<8x128xf32>
    %38 = arith.subf %37, %36 : vector<8x128xf32>
    %39 = arith.mulf %35, %38 : vector<8x128xf32>
    %40 = tpu.iota {dimensions = array<i32: 0>} : vector<8x128xi32>
    %41 = tpu.iota {dimensions = array<i32: 1>} : vector<8x128xi32>
    %c8_i32 = arith.constant 8 : i32
    %42 = arith.muli %arg1, %c8_i32 : i32
    %43 = vector.broadcast %42 : i32 to vector<8x128xi32>
    %44 = arith.addi %43, %40 : vector<8x128xi32>
    %c128_i32 = arith.constant 128 : i32
    %45 = vector.broadcast %c128_i32 : i32 to vector<8x128xi32>
    %46 = arith.muli %44, %45 : vector<8x128xi32>
    %47 = arith.addi %46, %41 : vector<8x128xi32>
    %c256_i32 = arith.constant 256 : i32
    %48 = vector.broadcast %c256_i32 : i32 to vector<8x128xi32>
    %49 = arith.cmpi slt, %47, %48 : vector<8x128xi32>
    %cst_32 = arith.constant 0.000000e+00 : f32
    %50 = vector.broadcast %cst_32 : f32 to vector<8x128xf32>
    %51 = arith.select %49, %39, %50 : vector<8x128xi1>, vector<8x128xf32>
    %52 = arith.mulf %19, %51 : vector<8x128xf32>
    %c0_i32_33 = arith.constant 0 : i32
    %53 = vector.broadcast %c0_i32_33 : i32 to vector<8x128xi32>
    %54 = arith.cmpi eq, %4, %53 : vector<8x128xi32>
    %c0_34 = arith.constant 0 : index
    %c0_35 = arith.constant 0 : index
    %55 = vector.load %arg5[%c0_34, %c0_35] : memref<4x128xf32, #tpu.memory_space<vmem>>, vector<1x128xf32>
    %cst_36 = arith.constant 0.000000e+00 : f32
    %56 = vector.broadcast %cst_36 : f32 to vector<8x128xf32>
    %57 = arith.select %54, %52, %56 : vector<8x128xi1>, vector<8x128xf32>
    %cst_37 = arith.constant dense<0.000000e+00> : vector<128xf32>
    %58 = vector.multi_reduction <add>, %57, %cst_37 [0] : vector<8x128xf32> to vector<128xf32>
    %59 = vector.shape_cast %58 : vector<128xf32> to vector<1x128xf32>
    %60 = arith.addf %55, %59 : vector<1x128xf32>
    %c0_38 = arith.constant 0 : index
    %c0_39 = arith.constant 0 : index
    %61 = vector.load %arg5[%c0_38, %c0_39] : memref<4x128xf32, #tpu.memory_space<vmem>>, vector<1x128xf32>
    tpu.vector_store %arg5[%c0_38, %c0_39], %60 {strides = array<i32>} : memref<4x128xf32, #tpu.memory_space<vmem>>, vector<1x128xf32>,
    %c0_40 = arith.constant 0 : index
    %c0_41 = arith.constant 0 : index
    %62 = vector.load %arg6[%c0_40, %c0_41] : memref<4x128xf32, #tpu.memory_space<vmem>>, vector<1x128xf32>
    %cst_42 = arith.constant dense<0.000000e+00> : vector<128xf32>
    %63 = vector.multi_reduction <add>, %52, %cst_42 [0] : vector<8x128xf32> to vector<128xf32>
    %64 = vector.shape_cast %63 : vector<128xf32> to vector<1x128xf32>
    %65 = arith.addf %62, %64 : vector<1x128xf32>
    %c0_43 = arith.constant 0 : index
    %c0_44 = arith.constant 0 : index
    %66 = vector.load %arg6[%c0_43, %c0_44] : memref<4x128xf32, #tpu.memory_space<vmem>>, vector<1x128xf32>
    tpu.vector_store %arg6[%c0_43, %c0_44], %65 {strides = array<i32>} : memref<4x128xf32, #tpu.memory_space<vmem>>, vector<1x128xf32>,
    %c0_45 = arith.constant 0 : index
    %c0_46 = arith.constant 0 : index
    %67 = vector.load %arg7[%c0_45, %c0_46] : memref<4x128xf32, #tpu.memory_space<vmem>>, vector<1x128xf32>
    %68 = arith.extui %54 : vector<8x128xi1> to vector<8x128xi32>
    %69 = arith.sitofp %68 : vector<8x128xi32> to vector<8x128xf32>
    %cst_47 = arith.constant dense<0.000000e+00> : vector<128xf32>
    %70 = vector.multi_reduction <add>, %69, %cst_47 [0] : vector<8x128xf32> to vector<128xf32>
    %71 = vector.shape_cast %70 : vector<128xf32> to vector<1x128xf32>
    %72 = arith.addf %67, %71 : vector<1x128xf32>
    %c0_48 = arith.constant 0 : index
    %c0_49 = arith.constant 0 : index
    %73 = vector.load %arg7[%c0_48, %c0_49] : memref<4x128xf32, #tpu.memory_space<vmem>>, vector<1x128xf32>
    tpu.vector_store %arg7[%c0_48, %c0_49], %72 {strides = array<i32>} : memref<4x128xf32, #tpu.memory_space<vmem>>, vector<1x128xf32>,
    %74 = arith.mulf %23, %51 : vector<8x128xf32>
    %c1_i32 = arith.constant 1 : i32
    %75 = vector.broadcast %c1_i32 : i32 to vector<8x128xi32>
    %76 = arith.cmpi eq, %4, %75 : vector<8x128xi32>
    %c1_50 = arith.constant 1 : index
    %c0_51 = arith.constant 0 : index
    %77 = vector.load %arg5[%c1_50, %c0_51] : memref<4x128xf32, #tpu.memory_space<vmem>>, vector<1x128xf32>
    %cst_52 = arith.constant 0.000000e+00 : f32
    %78 = vector.broadcast %cst_52 : f32 to vector<8x128xf32>
    %79 = arith.select %76, %74, %78 : vector<8x128xi1>, vector<8x128xf32>
    %cst_53 = arith.constant dense<0.000000e+00> : vector<128xf32>
    %80 = vector.multi_reduction <add>, %79, %cst_53 [0] : vector<8x128xf32> to vector<128xf32>
    %81 = vector.shape_cast %80 : vector<128xf32> to vector<1x128xf32>
    %82 = arith.addf %77, %81 : vector<1x128xf32>
    %c1_54 = arith.constant 1 : index
    %c0_55 = arith.constant 0 : index
    %83 = vector.load %arg5[%c1_54, %c0_55] : memref<4x128xf32, #tpu.memory_space<vmem>>, vector<1x128xf32>
    tpu.vector_store %arg5[%c1_54, %c0_55], %82 {strides = array<i32>} : memref<4x128xf32, #tpu.memory_space<vmem>>, vector<1x128xf32>,
    %c1_56 = arith.constant 1 : index
    %c0_57 = arith.constant 0 : index
    %84 = vector.load %arg6[%c1_56, %c0_57] : memref<4x128xf32, #tpu.memory_space<vmem>>, vector<1x128xf32>
    %cst_58 = arith.constant dense<0.000000e+00> : vector<128xf32>
    %85 = vector.multi_reduction <add>, %74, %cst_58 [0] : vector<8x128xf32> to vector<128xf32>
    %86 = vector.shape_cast %85 : vector<128xf32> to vector<1x128xf32>
    %87 = arith.addf %84, %86 : vector<1x128xf32>
    %c1_59 = arith.constant 1 : index
    %c0_60 = arith.constant 0 : index
    %88 = vector.load %arg6[%c1_59, %c0_60] : memref<4x128xf32, #tpu.memory_space<vmem>>, vector<1x128xf32>
    tpu.vector_store %arg6[%c1_59, %c0_60], %87 {strides = array<i32>} : memref<4x128xf32, #tpu.memory_space<vmem>>, vector<1x128xf32>,
    %c1_61 = arith.constant 1 : index
    %c0_62 = arith.constant 0 : index
    %89 = vector.load %arg7[%c1_61, %c0_62] : memref<4x128xf32, #tpu.memory_space<vmem>>, vector<1x128xf32>
    %90 = arith.extui %76 : vector<8x128xi1> to vector<8x128xi32>
    %91 = arith.sitofp %90 : vector<8x128xi32> to vector<8x128xf32>
    %cst_63 = arith.constant dense<0.000000e+00> : vector<128xf32>
    %92 = vector.multi_reduction <add>, %91, %cst_63 [0] : vector<8x128xf32> to vector<128xf32>
    %93 = vector.shape_cast %92 : vector<128xf32> to vector<1x128xf32>
    %94 = arith.addf %89, %93 : vector<1x128xf32>
    %c1_64 = arith.constant 1 : index
    %c0_65 = arith.constant 0 : index
    %95 = vector.load %arg7[%c1_64, %c0_65] : memref<4x128xf32, #tpu.memory_space<vmem>>, vector<1x128xf32>
    tpu.vector_store %arg7[%c1_64, %c0_65], %94 {strides = array<i32>} : memref<4x128xf32, #tpu.memory_space<vmem>>, vector<1x128xf32>,
    %96 = arith.mulf %27, %51 : vector<8x128xf32>
    %c2_i32 = arith.constant 2 : i32
    %97 = vector.broadcast %c2_i32 : i32 to vector<8x128xi32>
    %98 = arith.cmpi eq, %4, %97 : vector<8x128xi32>
    %c2_66 = arith.constant 2 : index
    %c0_67 = arith.constant 0 : index
    %99 = vector.load %arg5[%c2_66, %c0_67] : memref<4x128xf32, #tpu.memory_space<vmem>>, vector<1x128xf32>
    %cst_68 = arith.constant 0.000000e+00 : f32
    %100 = vector.broadcast %cst_68 : f32 to vector<8x128xf32>
    %101 = arith.select %98, %96, %100 : vector<8x128xi1>, vector<8x128xf32>
    %cst_69 = arith.constant dense<0.000000e+00> : vector<128xf32>
    %102 = vector.multi_reduction <add>, %101, %cst_69 [0] : vector<8x128xf32> to vector<128xf32>
    %103 = vector.shape_cast %102 : vector<128xf32> to vector<1x128xf32>
    %104 = arith.addf %99, %103 : vector<1x128xf32>
    %c2_70 = arith.constant 2 : index
    %c0_71 = arith.constant 0 : index
    %105 = vector.load %arg5[%c2_70, %c0_71] : memref<4x128xf32, #tpu.memory_space<vmem>>, vector<1x128xf32>
    tpu.vector_store %arg5[%c2_70, %c0_71], %104 {strides = array<i32>} : memref<4x128xf32, #tpu.memory_space<vmem>>, vector<1x128xf32>,
    %c2_72 = arith.constant 2 : index
    %c0_73 = arith.constant 0 : index
    %106 = vector.load %arg6[%c2_72, %c0_73] : memref<4x128xf32, #tpu.memory_space<vmem>>, vector<1x128xf32>
    %cst_74 = arith.constant dense<0.000000e+00> : vector<128xf32>
    %107 = vector.multi_reduction <add>, %96, %cst_74 [0] : vector<8x128xf32> to vector<128xf32>
    %108 = vector.shape_cast %107 : vector<128xf32> to vector<1x128xf32>
    %109 = arith.addf %106, %108 : vector<1x128xf32>
    %c2_75 = arith.constant 2 : index
    %c0_76 = arith.constant 0 : index
    %110 = vector.load %arg6[%c2_75, %c0_76] : memref<4x128xf32, #tpu.memory_space<vmem>>, vector<1x128xf32>
    tpu.vector_store %arg6[%c2_75, %c0_76], %109 {strides = array<i32>} : memref<4x128xf32, #tpu.memory_space<vmem>>, vector<1x128xf32>,
    %c2_77 = arith.constant 2 : index
    %c0_78 = arith.constant 0 : index
    %111 = vector.load %arg7[%c2_77, %c0_78] : memref<4x128xf32, #tpu.memory_space<vmem>>, vector<1x128xf32>
    %112 = arith.extui %98 : vector<8x128xi1> to vector<8x128xi32>
    %113 = arith.sitofp %112 : vector<8x128xi32> to vector<8x128xf32>
    %cst_79 = arith.constant dense<0.000000e+00> : vector<128xf32>
    %114 = vector.multi_reduction <add>, %113, %cst_79 [0] : vector<8x128xf32> to vector<128xf32>
    %115 = vector.shape_cast %114 : vector<128xf32> to vector<1x128xf32>
    %116 = arith.addf %111, %115 : vector<1x128xf32>
    %c2_80 = arith.constant 2 : index
    %c0_81 = arith.constant 0 : index
    %117 = vector.load %arg7[%c2_80, %c0_81] : memref<4x128xf32, #tpu.memory_space<vmem>>, vector<1x128xf32>
    tpu.vector_store %arg7[%c2_80, %c0_81], %116 {strides = array<i32>} : memref<4x128xf32, #tpu.memory_space<vmem>>, vector<1x128xf32>,
    %118 = arith.mulf %31, %51 : vector<8x128xf32>
    %c3_i32 = arith.constant 3 : i32
    %119 = vector.broadcast %c3_i32 : i32 to vector<8x128xi32>
    %120 = arith.cmpi eq, %4, %119 : vector<8x128xi32>
    %c3_82 = arith.constant 3 : index
    %c0_83 = arith.constant 0 : index
    %121 = vector.load %arg5[%c3_82, %c0_83] : memref<4x128xf32, #tpu.memory_space<vmem>>, vector<1x128xf32>
    %cst_84 = arith.constant 0.000000e+00 : f32
    %122 = vector.broadcast %cst_84 : f32 to vector<8x128xf32>
    %123 = arith.select %120, %118, %122 : vector<8x128xi1>, vector<8x128xf32>
    %cst_85 = arith.constant dense<0.000000e+00> : vector<128xf32>
    %124 = vector.multi_reduction <add>, %123, %cst_85 [0] : vector<8x128xf32> to vector<128xf32>
    %125 = vector.shape_cast %124 : vector<128xf32> to vector<1x128xf32>
    %126 = arith.addf %121, %125 : vector<1x128xf32>
    %c3_86 = arith.constant 3 : index
    %c0_87 = arith.constant 0 : index
    %127 = vector.load %arg5[%c3_86, %c0_87] : memref<4x128xf32, #tpu.memory_space<vmem>>, vector<1x128xf32>
    tpu.vector_store %arg5[%c3_86, %c0_87], %126 {strides = array<i32>} : memref<4x128xf32, #tpu.memory_space<vmem>>, vector<1x128xf32>,
    %c3_88 = arith.constant 3 : index
    %c0_89 = arith.constant 0 : index
    %128 = vector.load %arg6[%c3_88, %c0_89] : memref<4x128xf32, #tpu.memory_space<vmem>>, vector<1x128xf32>
    %cst_90 = arith.constant dense<0.000000e+00> : vector<128xf32>
    %129 = vector.multi_reduction <add>, %118, %cst_90 [0] : vector<8x128xf32> to vector<128xf32>
    %130 = vector.shape_cast %129 : vector<128xf32> to vector<1x128xf32>
    %131 = arith.addf %128, %130 : vector<1x128xf32>
    %c3_91 = arith.constant 3 : index
    %c0_92 = arith.constant 0 : index
    %132 = vector.load %arg6[%c3_91, %c0_92] : memref<4x128xf32, #tpu.memory_space<vmem>>, vector<1x128xf32>
    tpu.vector_store %arg6[%c3_91, %c0_92], %131 {strides = array<i32>} : memref<4x128xf32, #tpu.memory_space<vmem>>, vector<1x128xf32>,
    %c3_93 = arith.constant 3 : index
    %c0_94 = arith.constant 0 : index
    %133 = vector.load %arg7[%c3_93, %c0_94] : memref<4x128xf32, #tpu.memory_space<vmem>>, vector<1x128xf32>
    %134 = arith.extui %120 : vector<8x128xi1> to vector<8x128xi32>
    %135 = arith.sitofp %134 : vector<8x128xi32> to vector<8x128xf32>
    %cst_95 = arith.constant dense<0.000000e+00> : vector<128xf32>
    %136 = vector.multi_reduction <add>, %135, %cst_95 [0] : vector<8x128xf32> to vector<128xf32>
    %137 = vector.shape_cast %136 : vector<128xf32> to vector<1x128xf32>
    %138 = arith.addf %133, %137 : vector<1x128xf32>
    %c3_96 = arith.constant 3 : index
    %c0_97 = arith.constant 0 : index
    %139 = vector.load %arg7[%c3_96, %c0_97] : memref<4x128xf32, #tpu.memory_space<vmem>>, vector<1x128xf32>
    tpu.vector_store %arg7[%c3_96, %c0_97], %138 {strides = array<i32>} : memref<4x128xf32, #tpu.memory_space<vmem>>, vector<1x128xf32>,
    %c0_i32_98 = arith.constant 0 : i32
    %140 = arith.cmpi eq, %arg1, %c0_i32_98 : i32
    %141 = arith.extui %140 : i1 to i32
    %c0_i32_99 = arith.constant 0 : i32
    %142 = arith.cmpi ne, %141, %c0_i32_99 : i32
    scf.if %142 {
      %c0_100 = arith.constant 0 : index
      %c0_101 = arith.constant 0 : index
      %143 = vector.load %arg5[%c0_100, %c0_101] : memref<4x128xf32, #tpu.memory_space<vmem>>, vector<4x128xf32>
      %cst_102 = arith.constant dense<0.000000e+00> : vector<4xf32>
      %144 = vector.multi_reduction <add>, %143, %cst_102 [1] : vector<4x128xf32> to vector<4xf32>
      %145 = vector.shape_cast %144 : vector<4xf32> to vector<4x1xf32>
      %c0_103 = arith.constant 0 : index
      %c0_104 = arith.constant 0 : index
      %146 = vector.load %arg6[%c0_103, %c0_104] : memref<4x128xf32, #tpu.memory_space<vmem>>, vector<4x128xf32>
      %cst_105 = arith.constant dense<0.000000e+00> : vector<4xf32>
      %147 = vector.multi_reduction <add>, %146, %cst_105 [1] : vector<4x128xf32> to vector<4xf32>
      %148 = vector.shape_cast %147 : vector<4xf32> to vector<4x1xf32>
      %c0_106 = arith.constant 0 : index
      %c0_107 = arith.constant 0 : index
      %149 = vector.load %arg7[%c0_106, %c0_107] : memref<4x128xf32, #tpu.memory_space<vmem>>, vector<4x128xf32>
      %cst_108 = arith.constant dense<0.000000e+00> : vector<4xf32>
      %150 = vector.multi_reduction <add>, %149, %cst_108 [1] : vector<4x128xf32> to vector<4xf32>
      %151 = vector.shape_cast %150 : vector<4xf32> to vector<4x1xf32>
      %152 = arith.addf %148, %151 : vector<4x1xf32>
      %153 = arith.subf %152, %145 : vector<4x1xf32>
      %cst_109 = arith.constant 1.000000e-16 : f32
      %154 = vector.broadcast %cst_109 : f32 to vector<4x1xf32>
      %155 = arith.addf %153, %154 : vector<4x1xf32>
      %156 = arith.divf %145, %155 : vector<4x1xf32>
      %c0_110 = arith.constant 0 : index
      %c0_111 = arith.constant 0 : index
      %c0_112 = arith.constant 0 : index
      %157 = vector.load %arg4[%c0_110, %c0_111, %c0_112] : memref<1x4x1xf32, #tpu.memory_space<vmem>>, vector<1x4x1xf32>
      %158 = vector.shape_cast %157 : vector<1x4x1xf32> to vector<4x1xf32>
      %159 = vector.shape_cast %156 : vector<4x1xf32> to vector<1x4x1xf32>
      tpu.vector_store %arg4[%c0_110, %c0_111, %c0_112], %159 {strides = array<i32>} : memref<1x4x1xf32, #tpu.memory_space<vmem>>, vector<1x4x1xf32>,
    } else {
    }
    return
  }
  func.func @transform_0(%arg0: i32, %arg1: i32) -> (i32, i32, i32, i32) {
    %c0_i32 = arith.constant 0 : i32
    %c0_i32_0 = arith.constant 0 : i32
    %c0_i32_1 = arith.constant 0 : i32
    return %arg0, %c0_i32, %arg1, %c0_i32_0 : i32, i32, i32, i32
  }
  func.func @transform_1(%arg0: i32, %arg1: i32) -> (i32, i32, i32) {
    %c0_i32 = arith.constant 0 : i32
    %c0_i32_0 = arith.constant 0 : i32
    return %arg0, %arg1, %c0_i32 : i32, i32, i32
  }
  func.func @transform_2(%arg0: i32, %arg1: i32) -> (i32, i32, i32) {
    %c0_i32 = arith.constant 0 : i32
    %c0_i32_0 = arith.constant 0 : i32
    %c0_i32_1 = arith.constant 0 : i32
    return %arg0, %c0_i32, %c0_i32_0 : i32, i32, i32
  }
}

</mosaic_0001>

<bundles_post_ra>
// kernel: tpu_custom_call.1
= control target key start
LH: loop header
LB: loop body
LE: loop exit
PB: predicated region body
PF: predicated region fallthrough
CT: control target
= control target key end

     0   :  { %7 = vsyncpa [#allocation6], 0  ;;  %s891_s0 = inlined_call_operand.hbm [shape: f32[2,4,8,128], index: 0, kind: input, shape index: {}]   ;;  %s892_s1 = inlined_call_operand.hbm [shape: s32[2,8,128], index: 1, kind: input, shape index: {}]   ;;  %s893_s2 = inlined_call_operand.vmem [shape: f32[2,4,1], index: 2, kind: output, shape index: {}]  }
   0x1   :  { %9 = vsyncpa [#allocation6 + $0x1], 0 }
   0x2   :  { %10 = vsyncpa [#allocation8], 0 }
   0x3   :  { %12 = vsyncpa [#allocation8 + $0x1], 0  ;;  %s745_s9 = smov 0   ;;  %s747_s10 = smov 0  }
   0x4   :  { %s749_s11 = smov 0   ;;  %s751_s12 = smov 0  }
   0x5   :  { %s753_s13 = smov 0   ;;  %s755_s14 = smov 0  }
   0x6 LB: > { %s515_s15 = sadd.s32 4294967295, %s723_s14   ;;  %s30_s16 = sadd.s32 1, %s719_s13  ;;  %s723_s14 = sphi %s755_s14, %s18_s14   ;;  %s719_s13 = sphi %s753_s13, %s902_s13   ;;  %s715_s12 = sphi %s751_s12, %s901_s12   ;;  %s711_s11 = sphi %s749_s11, %s900_s11   ;;  %s707_s10 = sphi %s747_s10, %s899_s10   ;;  %s703_s9 = sphi %s745_s9, %s898_s9  }
   0x7   : > { %p32_p0 = scmp.ge.s32.totalorder %s30_s16, 2  ;;  %s39_s17 = sadd.s32 1, %s711_s11 }
   0x8   : > { %p46_p1 = scmp.ne.s32.totalorder %s711_s11, %s707_s10  ;;  %p47_p2 = scmp.eq.s32.totalorder %s723_s14, 0 }
   0x9   : > { %s904_s16 = smov (%p32_p0, %s30_s16), 0  ;;  %p52_p4 = scmp.ne.s32.totalorder %s707_s10, %s703_s9 }
   0xa   : > { %p781_p3 = por %p47_p2, %p46_p1  ;;  %s34_s19 = ssub.s32 %s719_s13, %s904_s16 }
   0xb   : > { %p53_p5 = scmp.eq.s32.totalorder %s515_s15, 0  ;;  %p37_p6 = scmp.eq.s32.totalorder %s34_s19, 0 }
   0xc   : > { %p549_p8 = scmp.lt.s32.totalorder %s723_s14, 2  ;;  %s797_s22 = sand.u32 1, %s711_s11  }
   0xd   : > { %p788_p7 = por %p53_p5, %p52_p4  ;;  %s537_s23 = sshll.u32 %s719_s13, 9 }
   0xe   : > { %s794_s21 = scalar_select %p37_p6, %s711_s11, %s39_s17  }
   0xf   : > { %s519_s24 = sshll.u32 %s797_s22, 5  ;;  %s141_s27 = scalar_lea.hbm %s891_s0, %s537_s23 }
  0x10   : > { %s134_s28 = scalar_lea.vmem [#allocation5], %s519_s24  ;;  %p806_p9 = pnand %p549_p8, %p781_p3 }
  0x11   : > { %s142_s29 = sshll.u32 %s134_s28, 4  ;;  %s131_s3 = scalar_lea.sflag [#allocation6], %s797_s22  ;;  %s143_s29 = int_to_ptr.vmem [resolvable:$true] %s142_s29 }
  0x12   : > { %p615_p10 = pneg %p806_p9  ;;  %s626_s4 = scalar_lea.vmem %s143_s29, 512 }
  0x13   : > { %p627_p11 = scmp.ne.s32.totalorder %s143_s29, %s626_s4  ;;  %s725_s5 = smov [#allocation5]  }
  0x14   : > { %s631_s6 = sshll.u32 %s725_s5, 4  ;;  %s632_s6 = int_to_ptr.vmem [resolvable:$false] %s631_s6 }
  0x15   : > { %p629_p12 = pnand %p627_p11, %p615_p10  ;;  %s633_s7 = scalar_lea.vmem %s632_s6, 1024 }
  0x16   : > { %p634_p0 = scmp.lt.s32.totalorder %s143_s29, %s632_s6  ;;  %p635_p1 = scmp.lt.s32.totalorder %s633_s7, %s626_s4 }
  0x17   : > { %p630_p13 = pneg %p629_p12 }
  0x18   : > { %p636_p2 = por %p635_p1, %p634_p0 }
  0x1a   : > { %p637_p3 = pnand %p636_p2, %p630_p13 }
  0x1c   : > { %640 = shalt.err (!%p637_p3)
}
  0x1d   : > { %s726_s8 = smov 128   ;;  %s727_s9 = smov 8  }
  0x1e   : > { %545 = dma.hbm_to_vmem [thread:$0]  (!%p806_p9), %s141_s27, 512, %s143_s29, %s131_s3, %s726_s8, %s726_s8, %s727_s9  }
  0x1f   : > { %p524_p4 = scmp.ge.s32.totalorder %s723_s14, 1  ;;  %p169_p5 = scmp.lt.s32.totalorder %s723_s14, 3 }
  0x20   : > { %s522_s15 = sshll.u32 %s797_s22, 3  ;;  %s523_s18 = sshll.u32 %s719_s13, 7 }
  0x21   : > { %p821_p6 = pnand %p524_p4, %p169_p5  ;;  %s156_s19 = scalar_lea.vmem [#allocation7], %s522_s15 }
  0x22   : > { %s164_s23 = sshll.u32 %s156_s19, 4  ;;  %s162_s26 = scalar_lea.hbm %s892_s1, %s523_s18  ;;  %s165_s23 = int_to_ptr.vmem [resolvable:$true] %s164_s23 }
  0x23   : > { %s153_s28 = scalar_lea.sflag [#allocation8], %s797_s22  ;;  %s654_s4 = scalar_lea.vmem %s165_s23, 128 }
  0x24   : > { %p655_p8 = scmp.ne.s32.totalorder %s165_s23, %s654_s4  ;;  %s728_s27 = smov [#allocation7]  }
  0x25   : > { %s659_s29 = sshll.u32 %s728_s27, 4  ;;  %s660_s29 = int_to_ptr.vmem [resolvable:$false] %s659_s29 }
  0x26   : > { %p657_p11 = pnand %p655_p8, %p615_p10  ;;  %s661_s3 = scalar_lea.vmem %s660_s29, 256 }
  0x27   : > { %p662_p13 = scmp.lt.s32.totalorder %s165_s23, %s660_s29  ;;  %p663_p0 = scmp.lt.s32.totalorder %s661_s3, %s654_s4 }
  0x28   : > { %p658_p12 = pneg %p657_p11 }
  0x29   : > { %p664_p1 = por %p663_p0, %p662_p13 }
  0x2b   : > { %p665_p2 = pnand %p664_p1, %p658_p12 }
  0x2d   : > { %668 = shalt.err (!%p665_p2)
}
  0x2e   : > { %548 = dma.hbm_to_vmem [thread:$0]  (!%p806_p9), %s162_s26, 128, %s165_s23, %s153_s28  }
  0x2f   : > { %173 = sbr.rel (%p821_p6) target bundleno = 300 (0x12c), region = 28  ;;  %s175_s22 = sand.u32 (!%p821_p6), 1, %s707_s10  }
  0x30   : > { %s525_s5 = sshll.u32 (!%p821_p6), %s175_s22, 5  ;;  %s176_s6 = scalar_lea.sflag (!%p821_p6), [#allocation6], %s175_s22 }
  0x31   : > { %s179_s7 = scalar_lea.vmem (!%p821_p6), [#allocation5], %s525_s5 }
  0x34   : > { %694 = dma.done.wait (%p788_p7), %s176_s6, 512  }
  0x35   : > { %696 = vsyncadd (%p788_p7), %s176_s6, 4294966784  ;;  %s526_s8 = sshll.u32 %s175_s22, 3  ;;  %s185_s9 = scalar_lea.sflag [#allocation8], %s175_s22 }
  0x36   : > { %s188_s15 = scalar_lea.vmem [#allocation7], %s526_s8 }
  0x37   : > { %698 = dma.done.wait (%p788_p7), %s185_s9, 128  }
  0x38   : > { %700 = vsyncadd (%p788_p7), %s185_s9, 4294967168  ;;  %v729_v0 = vmov 0.0   ;;  %v225_v1 = vld [vmem:[%s179_s7] sm:$0xff]  ;;  %v528_v2 = vld [vmem:[%s179_s7 + $0x8] sm:$0xff]  ;;  %v254_v60 = vlaneseq  ;;  %vm397_vm5 = vcmask 1043456   ;;  %p213_p7 = scmp.lt.s32.totalorder %s715_s12, 1 }
  0x39   : > { %222 = vst [vmem:[#allocation3] sm:$0xf] %v729_v0  ;;  %221 = vst [vmem:[#allocation2] sm:$0xf] %v729_v0  ;;  %v529_v3 = vld [vmem:[%s179_s7 + $0x10] sm:$0xff]  ;;  %v228_v4 = vmax.f32 %v225_v1, %v528_v2  ;;  %v530_v5 = vld [vmem:[%s179_s7 + $0x18] sm:$0xff] }
  0x3a   : > { %223 = vst [vmem:[#allocation4] sm:$0xf] %v729_v0  ;;  %v846_v6 = vld [vmem:[%s188_s15] sm:$0xff]  ;;  %v255_v61 = vshrl.u32 %v254_v60, 7  ;;  %v257_v62 = vand.u32 127, %v254_v60  ;;  %s906_s12 = smov (!%p213_p7, %s715_s12), 1 }
  0x3b   : > { %v231_v7 = vmax.f32 %v228_v4, %v529_v3  ;;  %vm266_vm0 = vcmp.eq.s32.totalorder %v846_v6, 0  ;;  %vm298_vm1 = vcmp.eq.s32.totalorder %v846_v6, 1  ;;  %vm330_vm2 = vcmp.eq.s32.totalorder %v846_v6, 2  ;;  %s527_s20 = sshll.u32 %s906_s12, 2 }
  0x3c   : > { %v531_v8 = vsel %vm266_vm0, 1.0, %v729_v0  ;;  %v532_v9 = vsel %vm298_vm1, 1.0, %v729_v0  ;;  %vm362_vm3 = vcmp.eq.s32.totalorder %v846_v6, 3  ;;  %v533_v13 = vsel %vm330_vm2, 1.0, %v729_v0  ;;  %s216_s18 = scalar_lea.vmem %s893_s2, %s527_s20 }
  0x3d   : > { %v234_v10 = vmax.f32 %v231_v7, %v530_v5  ;;  %v289_v11 = vrot.slane %v531_v8, 4  ;;  %v321_v12 = vrot.slane %v532_v9, 4  ;;  %v353_v14 = vrot.slane %v533_v13, 4 }
  0x3e   : > { %v534_v15 = vsel %vm362_vm3, 1.0, %v729_v0  ;;  %v261_v63 = vmul.u32 128, %v255_v61  ;;  %vm414_vm6 = vcmask 3072  }
  0x3f   : > { %v235_v16 = vsub.f32 %v225_v1, %v234_v10  ;;  %v238_v17 = vsub.f32 %v528_v2, %v234_v10  ;;  %v241_v18 = vsub.f32 %v529_v3, %v234_v10  ;;  %v244_v19 = vsub.f32 %v530_v5, %v234_v10 }
  0x40   : > { %v290_v20 = vadd.f32 %v531_v8, %v289_v11  ;;  %v322_v21 = vadd.f32 %v532_v9, %v321_v12  ;;  %v354_v22 = vadd.f32 %v533_v13, %v353_v14  ;;  %v385_v23 = vrot.slane %v534_v15, 4 }
  0x41   : > { %v236_v24 = vmul.f32 1.442695, %v235_v16  ;;  %v239_v25 = vmul.f32 1.442695, %v238_v17  ;;  %v242_v26 = vmul.f32 1.442695, %v241_v18  ;;  %v262_v1 = vadd.s32 %v261_v63, %v257_v62 }
  0x42   : > { %v245_v27 = vmul.f32 1.442695, %v244_v19  ;;  %v291_v28 = vrot.slane %v290_v20, 2  ;;  %v323_v29 = vrot.slane %v322_v21, 2  ;;  %v355_v30 = vrot.slane %v354_v22, 2 }
  0x43   : > { %601 = vpow2.f32 %v236_v24  ;;  %v386_v31 = vadd.f32 %v534_v15, %v385_v23  ;;  %v286_v39 = vld [vmem:[#allocation4] sm:$0x1]  ;;  %v318_v40 = vld [vmem:[#allocation4 + $0x1] sm:$0x1]  ;;  %v350_v41 = vld [vmem:[#allocation4 + $0x2] sm:$0x1] }
  0x44   : > { %603 = vpow2.f32 %v239_v25  ;;  %v292_v32 = vadd.f32 %v291_v28, %v290_v20  ;;  %v324_v33 = vadd.f32 %v323_v29, %v322_v21  ;;  %v356_v34 = vadd.f32 %v355_v30, %v354_v22  ;;  %v382_v50 = vld [vmem:[#allocation4 + $0x3] sm:$0x1] }
  0x45   : > { %605 = vpow2.f32 %v242_v26  ;;  %v387_v35 = vrot.slane %v386_v31, 2  ;;  %vm263_vm4 = vcmp.lt.s32.totalorder %v262_v1, 256 }
  0x46   : > { %607 = vpow2.f32 %v245_v27  ;;  %v293_v36 = vrot.slane %v292_v32, 1  ;;  %v325_v37 = vrot.slane %v324_v33, 1  ;;  %v357_v38 = vrot.slane %v356_v34, 1 }
  0x47   : > { %v388_v42 = vadd.f32 %v387_v35, %v386_v31 }
  0x48   : > { %v294_v43 = vadd.f32 %v293_v36, %v292_v32  ;;  %v326_v44 = vadd.f32 %v325_v37, %v324_v33  ;;  %v358_v45 = vadd.f32 %v357_v38, %v356_v34 }
  0x49   : > { %v389_v46 = vrot.slane %v388_v42, 1 }
  0x4a   : > { %v295_v47 = vadd.f32 %v294_v43, %v286_v39  ;;  %v327_v48 = vadd.f32 %v326_v44, %v318_v40  ;;  %v359_v49 = vadd.f32 %v358_v45, %v350_v41 }
  0x4b   : > { %v390_v51 = vadd.f32 %v389_v46, %v388_v42  ;;  %v277_v42 = vld [vmem:[#allocation3] sm:$0x1] }
  0x4c   : > { %296 = vst [vmem:[#allocation4] sm:$0x1] %v295_v47  ;;  %328 = vst [vmem:[#allocation4 + $0x1] sm:$0x1] %v327_v48  ;;  %v309_v47 = vld [vmem:[#allocation3 + $0x1] sm:$0x1] }
  0x4d   : > { %360 = vst [vmem:[#allocation4 + $0x2] sm:$0x1] %v359_v49  ;;  %v391_v52 = vadd.f32 %v390_v51, %v382_v50  ;;  %v341_v48 = vld [vmem:[#allocation3 + $0x2] sm:$0x1]  ;;  %v373_v49 = vld [vmem:[#allocation3 + $0x3] sm:$0x1] }
  0x4f   : > { %392 = vst [vmem:[#allocation4 + $0x3] sm:$0x1] %v391_v52 }
  0x50   : > { %v602_v53 = vpop.eup %601 }
  0x51   : > { %v604_v54 = vpop.eup %603 }
  0x52   : > { %v606_v55 = vpop.eup %605  ;;  %v247_v56 = vadd.f32 %v604_v54, %v602_v53 }
  0x53   : > { %v608_v57 = vpop.eup %607 }
  0x54   : > { %v248_v58 = vadd.f32 %v606_v55, %v247_v56 }
  0x56   : > { %v249_v59 = vadd.f32 %v608_v57, %v248_v58  ;;  %v267_v58 = vld [vmem:[#allocation2] sm:$0x1] }
  0x58   : > { %609 = vrcp.f32 %v249_v59 }
  0x65   : > { %v610_v0 = vpop.eup %609 }
  0x66   : > { %v251_v2 = vmul.f32 %v610_v0, %v249_v59 }
  0x68   : > { %v252_v3 = vsub.f32 2.0, %v251_v2 }
  0x6a   : > { %v253_v4 = vmul.f32 %v610_v0, %v252_v3  ;;  %v299_v3 = vld [vmem:[#allocation2 + $0x1] sm:$0x1] }
  0x6c   : > { %v264_v5 = vsel %vm263_vm4, %v253_v4, 0.0  ;;  %v331_v4 = vld [vmem:[#allocation2 + $0x2] sm:$0x1] }
  0x6d   : > { %v265_v7 = vmul.f32 %v602_v53, %v264_v5  ;;  %v297_v8 = vmul.f32 %v604_v54, %v264_v5  ;;  %v329_v9 = vmul.f32 %v606_v55, %v264_v5  ;;  %v361_v10 = vmul.f32 %v608_v57, %v264_v5  ;;  %v363_v5 = vld [vmem:[#allocation2 + $0x3] sm:$0x1] }
  0x6f   : > { %v278_v11 = vrot.slane %v265_v7, 4  ;;  %v310_v12 = vrot.slane %v297_v8, 4  ;;  %v342_v13 = vrot.slane %v329_v9, 4  ;;  %v374_v14 = vrot.slane %v361_v10, 4 }
  0x70   : > { %v268_v15 = vsel %vm266_vm0, %v265_v7, 0.0  ;;  %v300_v16 = vsel %vm298_vm1, %v297_v8, 0.0  ;;  %v332_v17 = vsel %vm330_vm2, %v329_v9, 0.0  ;;  %v364_v18 = vsel %vm362_vm3, %v361_v10, 0.0 }
  0x71   : > { %v279_v19 = vadd.f32 %v278_v11, %v265_v7  ;;  %v311_v20 = vadd.f32 %v310_v12, %v297_v8  ;;  %v343_v21 = vadd.f32 %v342_v13, %v329_v9  ;;  %v375_v22 = vadd.f32 %v374_v14, %v361_v10 }
  0x72   : > { %v269_v23 = vrot.slane %v268_v15, 4  ;;  %v301_v24 = vrot.slane %v300_v16, 4  ;;  %v333_v25 = vrot.slane %v332_v17, 4  ;;  %v365_v26 = vrot.slane %v364_v18, 4 }
  0x73   : > { %v280_v27 = vrot.slane %v279_v19, 2  ;;  %v312_v28 = vrot.slane %v311_v20, 2  ;;  %v344_v29 = vrot.slane %v343_v21, 2  ;;  %v376_v30 = vrot.slane %v375_v22, 2 }
  0x74   : > { %v270_v31 = vadd.f32 %v269_v23, %v268_v15  ;;  %v302_v32 = vadd.f32 %v301_v24, %v300_v16  ;;  %v334_v33 = vadd.f32 %v333_v25, %v332_v17  ;;  %v366_v34 = vadd.f32 %v365_v26, %v364_v18  ;;  %v405_v16 = vld [vmem:[#allocation4] sm:$0xf] }
  0x75   : > { %v281_v35 = vadd.f32 %v280_v27, %v279_v19  ;;  %v313_v36 = vadd.f32 %v312_v28, %v311_v20  ;;  %v345_v6 = vadd.f32 %v344_v29, %v343_v21  ;;  %v377_v37 = vadd.f32 %v376_v30, %v375_v22 }
  0x76   : > { %v271_v38 = vrot.slane %v270_v31, 2  ;;  %v303_v39 = vrot.slane %v302_v32, 2  ;;  %v335_v40 = vrot.slane %v334_v33, 2  ;;  %v367_v41 = vrot.slane %v366_v34, 2 }
  0x77   : > { %v282_v43 = vrot.slane %v281_v35, 1  ;;  %v314_v44 = vrot.slane %v313_v36, 1  ;;  %v346_v45 = vrot.slane %v345_v6, 1  ;;  %v378_v46 = vrot.slane %v377_v37, 1 }
  0x78   : > { %v272_v50 = vadd.f32 %v271_v38, %v270_v31  ;;  %v304_v51 = vadd.f32 %v303_v39, %v302_v32  ;;  %v336_v52 = vadd.f32 %v335_v40, %v334_v33  ;;  %v368_v53 = vadd.f32 %v367_v41, %v366_v34 }
  0x79   : > { %v283_v54 = vadd.f32 %v282_v43, %v281_v35  ;;  %v315_v55 = vadd.f32 %v314_v44, %v313_v36  ;;  %v347_v56 = vadd.f32 %v346_v45, %v345_v6  ;;  %v379_v57 = vadd.f32 %v378_v46, %v377_v37 }
  0x7a   : > { %v273_v59 = vrot.slane %v272_v50, 1  ;;  %v305_v60 = vrot.slane %v304_v51, 1  ;;  %v337_v61 = vrot.slane %v336_v52, 1  ;;  %v369_v62 = vrot.slane %v368_v53, 1 }
  0x7b   : > { %v284_v63 = vadd.f32 %v283_v54, %v277_v42  ;;  %v316_v0 = vadd.f32 %v315_v55, %v309_v47  ;;  %v348_v1 = vadd.f32 %v347_v56, %v341_v48  ;;  %v380_v2 = vadd.f32 %v379_v57, %v373_v49 }
  0x7c   : > { %v274_v7 = vadd.f32 %v273_v59, %v272_v50  ;;  %v306_v8 = vadd.f32 %v305_v60, %v304_v51  ;;  %v338_v9 = vadd.f32 %v337_v61, %v336_v52  ;;  %v370_v10 = vadd.f32 %v369_v62, %v368_v53 }
  0x7d   : > { %285 = vst [vmem:[#allocation3] sm:$0x1] %v284_v63  ;;  %317 = vst [vmem:[#allocation3 + $0x1] sm:$0x1] %v316_v0  ;;  %v406_v18 = vsel %vm397_vm5, %v405_v16, 0.0 }
  0x7e   : > { %349 = vst [vmem:[#allocation3 + $0x2] sm:$0x1] %v348_v1  ;;  %381 = vst [vmem:[#allocation3 + $0x3] sm:$0x1] %v380_v2  ;;  %v275_v11 = vadd.f32 %v274_v7, %v267_v58  ;;  %v307_v12 = vadd.f32 %v306_v8, %v299_v3  ;;  %v339_v13 = vadd.f32 %v338_v9, %v331_v4 }
  0x7f   : > { %v371_v14 = vadd.f32 %v370_v10, %v363_v5 }
  0x80   : > { %276 = vst [vmem:[#allocation2] sm:$0x1] %v275_v11  ;;  %308 = vst [vmem:[#allocation2 + $0x1] sm:$0x1] %v307_v12 }
  0x81   : > { %340 = vst [vmem:[#allocation2 + $0x2] sm:$0x1] %v339_v13  ;;  %372 = vst [vmem:[#allocation2 + $0x3] sm:$0x1] %v371_v14 }
  0x85   : > { %v401_v15 = vld [vmem:[#allocation3] sm:$0xf] }
  0x86   : > { %v402_v17 = vsel %vm397_vm5, %v401_v15, 0.0 }
  0x87   : > { %403 = vadd.xlane.f32.xlu0 %v402_v17 }
  0x88   : > { %v396_v19 = vld [vmem:[#allocation2] sm:$0xf] }
  0x89   : > { %v398_v20 = vsel %vm397_vm5, %v396_v19, 0.0 }
  0x8a   : > { %399 = vadd.xlane.f32.xlu1 %v398_v20 }
  0x8b   : > { %407 = vadd.xlane.f32.xlu0 %v406_v18 }
 0x110   : > { %v404_v21 = vpop.xlane.xlu0 %403 }
 0x113   : > { %v400_v23 = vpop.xlane.xlu1 %399 }
 0x114   : > { %v408_v22 = vpop.xlane.xlu0 %407 }
 0x115   : > { %v409_v24 = vadd.f32 %v408_v22, %v404_v21 }
 0x117   : > { %v410_v25 = vsub.f32 %v409_v24, %v400_v23 }
 0x119   : > { %v411_v26 = vadd.f32 1e-16, %v410_v25 }
 0x11b   : > { %611 = vrcp.f32 %v411_v26 }
 0x128   : > { %v612_v27 = vpop.eup %611 }
 0x129   : > { %v413_v28 = vmul.f32 %v612_v27, %v400_v23 }
 0x12b   : > { %415 = vst.msk [vmem:[%s216_s18] sm:$0xf] %vm414_vm6, %v413_v28 }
 0x12c PF: > { %s18_s14 = sadd.s32 1, %s723_s14   ;;  %s898_s9 = smov %s707_s10 }
 0x12d   : > { %p15_p9 = scmp.ge.s32.totalorder %s18_s14, 4   ;;  %s899_s10 = smov %s711_s11 }
 0x12e   : > { %s900_s11 = smov %s794_s21  ;;  %s901_s12 = smov %s719_s13 }
 0x12f   : > { %s902_s13 = smov %s904_s16  ;;  %17 = sbr.rel (!%p15_p9) target bundleno = 6 (0x6), region = 92 }
 0x134   :  { %435 = vsyncpa [#allocation6], 1 }
 0x135   :  { %437 = vsyncpa [#allocation6 + $0x1], 1 }
 0x136   :  { %438 = vsyncpa [#allocation8], 1 }
 0x137   :  { %440 = vsyncpa [#allocation8 + $0x1], 1 }

</bundles_post_ra>
